<compile_context>
chip_gen: v6e
topology: v6e:2x2x1
jax: 0.10.0
libtpu: 0.0.40
codegen_flags: <defaults>
</compile_context>

<pallas_src>
import functools

import jax
import jax.numpy as jnp
from jax.experimental import pallas as pl
from jax.experimental.pallas import tpu as pltpu

IN_FEATURES = 28 * 28      # 784 (kernel block uses the full last dim -> no K pad needed)
H1 = 128
H2 = 64
H2_PAD = 128               # hidden width padded to a full lane width
OUT_FEATURES = 10
OUT_PAD = 128              # lane-dense output width
NEG_PAD_BIAS = -1e30       # padded logits -> softmax prob exactly 0


def mlp_kernel(x_ref, w1_ref, b1_ref, w2_ref, b2_ref, w3_ref, b3_ref, o_ref):
    # x arrives as raw f32 straight from HBM; cast to bf16 in-kernel (VPU) so
    # the wrapper never materializes extra pad/cast passes over x.
    x_bf = x_ref[...].astype(jnp.bfloat16)

    # ---- fc1 + relu (bf16 MXU inputs, f32 accumulate, f32 epilogue) ----
    h1 = jnp.dot(x_bf, w1_ref[...], preferred_element_type=jnp.float32)
    h1 = jnp.maximum(h1 + b1_ref[...], 0.0)

    # ---- fc2 + relu (output width padded 64 -> 128; pad cols are exactly 0) ----
    h2 = jnp.dot(h1.astype(jnp.bfloat16), w2_ref[...],
                 preferred_element_type=jnp.float32)
    h2 = jnp.maximum(h2 + b2_ref[...], 0.0)

    # ---- fc3 + softmax over padded 128-lane output ----
    logits = jnp.dot(h2.astype(jnp.bfloat16), w3_ref[...],
                     preferred_element_type=jnp.float32)
    logits = logits + b3_ref[...]                 # pad columns get -1e30
    m = jnp.max(logits, axis=-1, keepdims=True)   # pads never win the max
    e = jnp.exp(logits - m)                       # pads underflow to exactly 0
    denom = jnp.sum(e, axis=-1, keepdims=True)
    # Exact divide (NOT approx reciprocal): keeps each row summing to 1 at f32
    # precision; the epilogue is not the bottleneck.
    o_ref[...] = (e / denom).astype(o_ref.dtype)


def _round_up(x, m):
    return (x + m - 1) // m * m


def prepare_params(w1, b1, w2, b2, w3, b3):
    """One-time weight padding / bf16 casting, hoisted out of the forward path.

    Weights are stored as (in, out) so the kernel computes x @ W (no transpose).
    """
    w1_bf = w1.astype(jnp.bfloat16)                                   # (784, 128)
    b1_f = b1.reshape(1, H1).astype(jnp.float32)

    # fc2: pad output width 64 -> 128 (zero cols + zero bias -> ReLU gives 0).
    w2_bf = jnp.pad(w2.astype(jnp.float32),
                    ((0, 0), (0, H2_PAD - H2))).astype(jnp.bfloat16)  # (128, 128)
    b2_f = jnp.pad(b2.reshape(1, H2).astype(jnp.float32),
                   ((0, 0), (0, H2_PAD - H2)))

    # fc3: pad input rows 64 -> 128 (zeros, matching the zero h2 pad columns)
    # and output cols 10 -> 128 (zero weights; -1e30 bias -> softmax exactly 0).
    w3_bf = jnp.pad(w3.astype(jnp.float32),
                    ((0, H2_PAD - H2),
                     (0, OUT_PAD - OUT_FEATURES))).astype(jnp.bfloat16)  # (128, 128)
    b3_f = jnp.pad(b3.reshape(1, OUT_FEATURES).astype(jnp.float32),
                   ((0, 0), (0, OUT_PAD - OUT_FEATURES)),
                   constant_values=NEG_PAD_BIAS)
    return (w1_bf, b1_f, w2_bf, b2_f, w3_bf, b3_f)


@functools.partial(jax.jit, static_argnames=("tile_b",))
def mlp_forward(x, params, *, tile_b=2048):
    """x: (B, ...) float, flattened to (B, 784) like x.view(-1, 28*28)."""
    w1_bf, b1_f, w2_bf, b2_f, w3_bf, b3_f = params
    B = x.shape[0]
    x2d = x.reshape(B, IN_FEATURES).astype(jnp.float32)  # reshape is free; no pad pass

    # Pick the batch tile (multiple of 8). For B >= 16, clamp it so the grid
    # has at least 2 steps -> both TensorCores participate on v7x.
    if B < 16:
        tile_b = 8
        if B < 8:  # pad tiny batches up to one sublane tile (negligible cost)
            x2d = jnp.pad(x2d, ((0, 8 - B), (0, 0)))
    else:
        tile_b = max(8, min(tile_b, _round_up(pl.cdiv(B, 2), 8)))
    rows = x2d.shape[0]
    num_steps = pl.cdiv(rows, tile_b)   # partial last block handled by Pallas masking

    def resident(shape):
        # Same block every grid step -> weights/biases stay resident in VMEM.
        return pl.BlockSpec(shape, lambda i: (0, 0))

    out = pl.pallas_call(
        mlp_kernel,
        out_shape=jax.ShapeDtypeStruct((rows, OUT_PAD), jnp.bfloat16),
        grid=(num_steps,),
        in_specs=[
            pl.BlockSpec((tile_b, IN_FEATURES), lambda i: (i, 0)),  # x tile (pipelined)
            resident((IN_FEATURES, H1)),
            resident((1, H1)),
            resident((H1, H2_PAD)),
            resident((1, H2_PAD)),
            resident((H2_PAD, OUT_PAD)),
            resident((1, OUT_PAD)),
        ],
        out_specs=pl.BlockSpec((tile_b, OUT_PAD), lambda i: (i, 0)),
        compiler_params=pltpu.CompilerParams(
            dimension_semantics=("parallel",),      # megacore sharding on v7x
            vmem_limit_bytes=48 * 1024 * 1024,      # safe on v7x's 64 MiB VMEM
        ),
    )(x2d, w1_bf, b1_f, w2_bf, b2_f, w3_bf, b3_f)

    # Strip batch padding + the 118 lane-padding columns; return f32 to callers.
    return out[:B, :OUT_FEATURES].astype(jnp.float32)


def init_linear(key, fan_in, fan_out):
    """PyTorch nn.Linear default init: U(-1/sqrt(fan_in), 1/sqrt(fan_in))."""
    kw, kb = jax.random.split(key)
    bound = 1.0 / jnp.sqrt(jnp.float32(fan_in))
    # Stored as (in, out) so the kernel does x @ W.
    w = jax.random.uniform(kw, (fan_in, fan_out), jnp.float32, -bound, bound)
    b = jax.random.uniform(kb, (1, fan_out), jnp.float32, -bound, bound)
    return w, b


if __name__ == "__main__":
    key = jax.random.PRNGKey(0)
    k_x, k1, k2, k3 = jax.random.split(key, 4)

    # Small MNIST-like batch: (B, C, H, W) = (2, 1, 28, 28)
    x = jax.random.normal(k_x, (2, 1, 28, 28), jnp.float32)

    w1, b1 = init_linear(k1, 28 * 28, 128)
    w2, b2 = init_linear(k2, 128, 64)
    w3, b3 = init_linear(k3, 64, 10)

    params = prepare_params(w1, b1, w2, b2, w3, b3)

    out = mlp_forward(x, params)
    out = jax.block_until_ready(out)

    # Sanity check against a plain-JAX f32 reference. Kernel uses bf16 matmul
    # inputs and a bf16 output store, so tolerances are set accordingly.
    x2d = x.reshape(x.shape[0], -1)
    h1 = jnp.maximum(x2d @ w1 + b1, 0.0)
    h2 = jnp.maximum(h1 @ w2 + b2, 0.0)
    ref = jax.nn.softmax(h2 @ w3 + b3, axis=1)

    assert out.shape == (2, 10)
    assert jnp.allclose(out, ref, atol=2e-2, rtol=2e-2)
    # Exact f32 normalization inside the kernel; only bf16 output rounding
    # remains (<= ~2e-3 per row sum).
    assert jnp.allclose(jnp.sum(out, axis=1), 1.0, atol=5e-3)

    print("KERNEL_OK")
</pallas_src>

<mosaic_0001>
module attributes {stable_mosaic.version = 11 : i64} {
  func.func @mlp_kernel(%arg0: i32, %arg1: memref<8x784xf32, #tpu.memory_space<vmem>>, %arg2: memref<784x128xbf16, #tpu.memory_space<vmem>>, %arg3: memref<1x128xf32, #tpu.memory_space<vmem>>, %arg4: memref<128x128xbf16, #tpu.memory_space<vmem>>, %arg5: memref<1x128xf32, #tpu.memory_space<vmem>>, %arg6: memref<128x128xbf16, #tpu.memory_space<vmem>>, %arg7: memref<1x128xf32, #tpu.memory_space<vmem>>, %arg8: memref<8x128xbf16, #tpu.memory_space<vmem>>) attributes {dimension_semantics = [#tpu.dimension_semantics<parallel>], iteration_bounds = array<i64: 1>, scalar_prefetch = 0 : i64, scratch_operands = 0 : i64, tpu.core_type = #tpu.core_type<tc>, window_params = [{transform_indices = @transform_0, window_bounds = array<i64: 8, 784>}, {pipeline_mode = #tpu.pipeline_mode<synchronous>, transform_indices = @transform_1, window_bounds = array<i64: 784, 128>}, {pipeline_mode = #tpu.pipeline_mode<synchronous>, transform_indices = @transform_2, window_bounds = array<i64: 1, 128>}, {pipeline_mode = #tpu.pipeline_mode<synchronous>, transform_indices = @transform_3, window_bounds = array<i64: 128, 128>}, {pipeline_mode = #tpu.pipeline_mode<synchronous>, transform_indices = @transform_4, window_bounds = array<i64: 1, 128>}, {pipeline_mode = #tpu.pipeline_mode<synchronous>, transform_indices = @transform_5, window_bounds = array<i64: 128, 128>}, {pipeline_mode = #tpu.pipeline_mode<synchronous>, transform_indices = @transform_6, window_bounds = array<i64: 1, 128>}, {transform_indices = @transform_7, window_bounds = array<i64: 8, 128>}]} {
    %c0 = arith.constant 0 : index
    %c0_0 = arith.constant 0 : index
    %0 = vector.load %arg1[%c0, %c0_0] : memref<8x784xf32, #tpu.memory_space<vmem>>, vector<8x784xf32>
    %1 = arith.truncf %0 : vector<8x784xf32> to vector<8x784xbf16>
    %c0_1 = arith.constant 0 : index
    %c0_2 = arith.constant 0 : index
    %2 = vector.load %arg2[%c0_1, %c0_2] : memref<784x128xbf16, #tpu.memory_space<vmem>>, vector<784x128xbf16>
    %cst = arith.constant dense<0.000000e+00> : vector<8x128xf32>
    %3 = tpu.matmul %1, %2, %cst {dimension_numbers = #tpu.dot_dimension_numbers<[1], [0], [0], [1], [0, 0, 1, 1], [], []>} : vector<8x784xbf16>, vector<784x128xbf16>, vector<8x128xf32> -> vector<8x128xf32>
    %c0_3 = arith.constant 0 : index
    %c0_4 = arith.constant 0 : index
    %4 = vector.load %arg3[%c0_3, %c0_4] : memref<1x128xf32, #tpu.memory_space<vmem>>, vector<1x128xf32>
    %5 = vector.broadcast %4 : vector<1x128xf32> to vector<8x128xf32>
    %6 = arith.addf %3, %5 : vector<8x128xf32>
    %cst_5 = arith.constant 0.000000e+00 : f32
    %7 = vector.broadcast %cst_5 : f32 to vector<8x128xf32>
    %8 = arith.maximumf %6, %7 : vector<8x128xf32>
    %9 = arith.truncf %8 : vector<8x128xf32> to vector<8x128xbf16>
    %c0_6 = arith.constant 0 : index
    %c0_7 = arith.constant 0 : index
    %10 = vector.load %arg4[%c0_6, %c0_7] : memref<128x128xbf16, #tpu.memory_space<vmem>>, vector<128x128xbf16>
    %cst_8 = arith.constant dense<0.000000e+00> : vector<8x128xf32>
    %11 = tpu.matmul %9, %10, %cst_8 {dimension_numbers = #tpu.dot_dimension_numbers<[1], [0], [0], [1], [0, 0, 1, 1], [], []>} : vector<8x128xbf16>, vector<128x128xbf16>, vector<8x128xf32> -> vector<8x128xf32>
    %c0_9 = arith.constant 0 : index
    %c0_10 = arith.constant 0 : index
    %12 = vector.load %arg5[%c0_9, %c0_10] : memref<1x128xf32, #tpu.memory_space<vmem>>, vector<1x128xf32>
    %13 = vector.broadcast %12 : vector<1x128xf32> to vector<8x128xf32>
    %14 = arith.addf %11, %13 : vector<8x128xf32>
    %cst_11 = arith.constant 0.000000e+00 : f32
    %15 = vector.broadcast %cst_11 : f32 to vector<8x128xf32>
    %16 = arith.maximumf %14, %15 : vector<8x128xf32>
    %17 = arith.truncf %16 : vector<8x128xf32> to vector<8x128xbf16>
    %c0_12 = arith.constant 0 : index
    %c0_13 = arith.constant 0 : index
    %18 = vector.load %arg6[%c0_12, %c0_13] : memref<128x128xbf16, #tpu.memory_space<vmem>>, vector<128x128xbf16>
    %cst_14 = arith.constant dense<0.000000e+00> : vector<8x128xf32>
    %19 = tpu.matmul %17, %18, %cst_14 {dimension_numbers = #tpu.dot_dimension_numbers<[1], [0], [0], [1], [0, 0, 1, 1], [], []>} : vector<8x128xbf16>, vector<128x128xbf16>, vector<8x128xf32> -> vector<8x128xf32>
    %c0_15 = arith.constant 0 : index
    %c0_16 = arith.constant 0 : index
    %20 = vector.load %arg7[%c0_15, %c0_16] : memref<1x128xf32, #tpu.memory_space<vmem>>, vector<1x128xf32>
    %21 = vector.broadcast %20 : vector<1x128xf32> to vector<8x128xf32>
    %22 = arith.addf %19, %21 : vector<8x128xf32>
    %cst_17 = arith.constant dense<0xFF800000> : vector<8xf32>
    %23 = vector.multi_reduction <maximumf>, %22, %cst_17 [1] : vector<8x128xf32> to vector<8xf32>
    %24 = vector.shape_cast %23 : vector<8xf32> to vector<8x1xf32>
    %25 = vector.broadcast %24 : vector<8x1xf32> to vector<8x128xf32>
    %26 = arith.subf %22, %25 : vector<8x128xf32>
    %27 = math.exp %26 : vector<8x128xf32>
    %cst_18 = arith.constant dense<0.000000e+00> : vector<8xf32>
    %28 = vector.multi_reduction <add>, %27, %cst_18 [1] : vector<8x128xf32> to vector<8xf32>
    %29 = vector.shape_cast %28 : vector<8xf32> to vector<8x1xf32>
    %30 = vector.broadcast %29 : vector<8x1xf32> to vector<8x128xf32>
    %31 = arith.divf %27, %30 : vector<8x128xf32>
    %32 = arith.truncf %31 : vector<8x128xf32> to vector<8x128xbf16>
    %c0_19 = arith.constant 0 : index
    %c0_20 = arith.constant 0 : index
    %33 = vector.load %arg8[%c0_19, %c0_20] : memref<8x128xbf16, #tpu.memory_space<vmem>>, vector<8x128xbf16>
    tpu.vector_store %arg8[%c0_19, %c0_20], %32 {strides = array<i32>} : memref<8x128xbf16, #tpu.memory_space<vmem>>, vector<8x128xbf16>,
    return
  }
  func.func @transform_0(%arg0: i32) -> (i32, i32) {
    %c0_i32 = arith.constant 0 : i32
    %c0_i32_0 = arith.constant 0 : i32
    return %arg0, %c0_i32 : i32, i32
  }
  func.func @transform_1(%arg0: i32) -> (i32, i32) {
    %c0_i32 = arith.constant 0 : i32
    %c0_i32_0 = arith.constant 0 : i32
    %c0_i32_1 = arith.constant 0 : i32
    return %c0_i32, %c0_i32_0 : i32, i32
  }
  func.func @transform_2(%arg0: i32) -> (i32, i32) {
    %c0_i32 = arith.constant 0 : i32
    %c0_i32_0 = arith.constant 0 : i32
    %c0_i32_1 = arith.constant 0 : i32
    return %c0_i32, %c0_i32_0 : i32, i32
  }
  func.func @transform_3(%arg0: i32) -> (i32, i32) {
    %c0_i32 = arith.constant 0 : i32
    %c0_i32_0 = arith.constant 0 : i32
    %c0_i32_1 = arith.constant 0 : i32
    return %c0_i32, %c0_i32_0 : i32, i32
  }
  func.func @transform_4(%arg0: i32) -> (i32, i32) {
    %c0_i32 = arith.constant 0 : i32
    %c0_i32_0 = arith.constant 0 : i32
    %c0_i32_1 = arith.constant 0 : i32
    return %c0_i32, %c0_i32_0 : i32, i32
  }
  func.func @transform_5(%arg0: i32) -> (i32, i32) {
    %c0_i32 = arith.constant 0 : i32
    %c0_i32_0 = arith.constant 0 : i32
    %c0_i32_1 = arith.constant 0 : i32
    return %c0_i32, %c0_i32_0 : i32, i32
  }
  func.func @transform_6(%arg0: i32) -> (i32, i32) {
    %c0_i32 = arith.constant 0 : i32
    %c0_i32_0 = arith.constant 0 : i32
    %c0_i32_1 = arith.constant 0 : i32
    return %c0_i32, %c0_i32_0 : i32, i32
  }
  func.func @transform_7(%arg0: i32) -> (i32, i32) {
    %c0_i32 = arith.constant 0 : i32
    %c0_i32_0 = arith.constant 0 : i32
    return %arg0, %c0_i32 : i32, i32
  }
}

</mosaic_0001>

<bundles_post_ra>
// kernel: mlp_forward.1
= control target key start
LH: loop header
LB: loop body
LE: loop exit
PB: predicated region body
PF: predicated region fallthrough
CT: control target
= control target key end

     0   :  { %12 = vsyncpa [#allocation3], 0  ;;  %s1157_s24 = smov [#allocation2]   ;;  %s1309_s0 = inlined_call_operand.vmem [shape: f32[8,784], index: 0, kind: input, shape index: {}]   ;;  %s1310_s1 = inlined_call_operand.hbm [shape: bf16[784,128], index: 1, kind: input, shape index: {}]   ;;  %s1311_s2 = inlined_call_operand.vmem [shape: f32[1,128], index: 2, kind: input, shape index: {}]   ;;  %s1312_s3 = inlined_call_operand.vmem [shape: bf16[128,128], index: 3, kind: input, shape index: {}]   ;;  %s1313_s4 = inlined_call_operand.vmem [shape: f32[1,128], index: 4, kind: input, shape index: {}]   ;;  %s1314_s5 = inlined_call_operand.vmem [shape: bf16[128,128], index: 5, kind: input, shape index: {}]   ;;  %s1315_s6 = inlined_call_operand.vmem [shape: f32[1,128], index: 6, kind: input, shape index: {}]   ;;  %s1316_s7 = inlined_call_operand.vmem [shape: bf16[8,128], index: 7, kind: output, shape index: {}]  }
   0x1   :  { %s20_s25 = sshll.u32 %s1157_s24, 4  ;;  %s21_s25 = int_to_ptr.vmem [resolvable:$true] %s20_s25 }
   0x2   :  { %s1143_s26 = scalar_lea.vmem %s21_s25, 6272  ;;  %p1148_p1 = scmp.lt.s32.totalorder %s21_s25, %s21_s25 }
   0x3   :  { %p1144_p0 = scmp.ne.s32.totalorder %s21_s25, %s1143_s26  ;;  %p1149_p2 = scmp.lt.s32.totalorder %s1143_s26, %s1143_s26 }
   0x5   :  { %p1150_p3 = por %p1149_p2, %p1148_p1 }
   0x7   :  { %p1151_p4 = pnand %p1150_p3, %p1144_p0 }
   0x9   :  { %1154 = shalt.err (!%p1151_p4)
}
   0xa   :  { %s1158_s27 = smov 64   ;;  %s1159_s28 = smov 4  }
   0xb   :  { %26 = dma.hbm_to_vmem [thread:$0]  %s1310_s1, 6272, %s21_s25, [#allocation3], %s1158_s27, %s1158_s27, %s1159_s28  }
   0xc   :  { %1155 = dma.done.wait [#allocation3], 6272  }
   0xd   :  { %1156 = vsyncadd [#allocation3], 4294961024  ;;  %v1066_v0 = vld [vmem:[#allocation2 + $0x78] sm:$0xff]   ;;  %v1070_v4 = vld [vmem:[#allocation2 + $0x70] sm:$0xff]   ;;  %v1160_v44 = vmov 0.0   ;;  %vm1161_vm0 = vmmov 0  }
   0xe   :  { %v1067_v1 = vld [vmem:[#allocation2 + $0x38] sm:$0xff]   ;;  %929 = vmatprep.subr.bf16.mxu0 %v1066_v0  ;;  %v1071_v5 = vld [vmem:[#allocation2 + $0x30] sm:$0xff]   ;;  %v1074_v8 = vld [vmem:[#allocation2 + $0x68] sm:$0xff]   ;;  %vm454_vm1 = vcmask 130048  }
   0xf   :  { %v1068_v2 = vld [vmem:[#allocation2 + $0xf8] sm:$0xff]   ;;  %930 = vmatpush3.bf16.msra.mxu0 %v1067_v1  ;;  %v1072_v6 = vld [vmem:[#allocation2 + $0xf0] sm:$0xff]   ;;  %v1075_v9 = vld [vmem:[#allocation2 + $0x28] sm:$0xff]  }
  0x10   :  { %v1069_v3 = vld [vmem:[#allocation2 + $0xb8] sm:$0xff]   ;;  %951 = vmatprep.subr.bf16.mxu1 %v1068_v2  ;;  %931 = vmatprep.subr.bf16.mxu0 %v1070_v4  ;;  %v1073_v7 = vld [vmem:[#allocation2 + $0xb0] sm:$0xff]   ;;  %v1076_v10 = vld [vmem:[#allocation2 + $0xe8] sm:$0xff]  }
  0x11   :  { %952 = vmatpush3.bf16.msra.mxu1 %v1069_v3  ;;  %v1077_v11 = vld [vmem:[#allocation2 + $0xa8] sm:$0xff]   ;;  %v1078_v12 = vld [vmem:[#allocation2 + $0x60] sm:$0xff]   ;;  %v1082_v16 = vld [vmem:[#allocation2 + $0x58] sm:$0xff]  }
  0x12   :  { %953 = vmatprep.subr.bf16.mxu1 %v1072_v6  ;;  %v1079_v13 = vld [vmem:[#allocation2 + $0x20] sm:$0xff]   ;;  %v1083_v17 = vld [vmem:[#allocation2 + $0x18] sm:$0xff]   ;;  %v1086_v20 = vld [vmem:[#allocation2 + $0x50] sm:$0xff]  }
  0x13   :  { %932 = vmatpush3.bf16.msra.mxu0 %v1071_v5  ;;  %v1080_v14 = vld [vmem:[#allocation2 + $0xe0] sm:$0xff]   ;;  %v1084_v18 = vld [vmem:[#allocation2 + $0xd8] sm:$0xff]   ;;  %v1087_v21 = vld [vmem:[#allocation2 + $0x10] sm:$0xff]  }
  0x14   :  { %933 = vmatprep.subr.bf16.mxu0 %v1074_v8  ;;  %v1081_v15 = vld [vmem:[#allocation2 + $0xa0] sm:$0xff]   ;;  %v1085_v19 = vld [vmem:[#allocation2 + $0x98] sm:$0xff]   ;;  %v1088_v22 = vld [vmem:[#allocation2 + $0xd0] sm:$0xff]  }
  0x15   :  { %954 = vmatpush3.bf16.msra.mxu1 %v1073_v7  ;;  %v1089_v23 = vld [vmem:[#allocation2 + $0x90] sm:$0xff]   ;;  %v1090_v24 = vld [vmem:[#allocation2 + $0x48] sm:$0xff]   ;;  %v1094_v28 = vld [vmem:[#allocation2 + $0x40] sm:$0xff]  }
  0x16   :  { %955 = vmatprep.subr.bf16.mxu1 %v1076_v10  ;;  %v1091_v25 = vld [vmem:[#allocation2 + $0x8] sm:$0xff]   ;;  %v1095_v29 = vld [vmem:[#allocation2] sm:$0xff]   ;;  %v1098_v36 = vld [vmem:[#allocation2 + $0x178] sm:$0xff]  }
  0x17   :  { %934 = vmatpush3.bf16.msra.mxu0 %v1075_v9  ;;  %v1092_v26 = vld [vmem:[#allocation2 + $0xc8] sm:$0xff]   ;;  %v1096_v30 = vld [vmem:[#allocation2 + $0xc0] sm:$0xff]   ;;  %v44_v37 = vld [vmem:[%s1309_s0 + $0x18] sm:$0xff] }
  0x18   :  { %935 = vmatprep.subr.bf16.mxu0 %v1078_v12  ;;  %v1093_v27 = vld [vmem:[#allocation2 + $0x88] sm:$0xff]   ;;  %v1097_v33 = vld [vmem:[#allocation2 + $0x80] sm:$0xff]   ;;  %v51_v38 = vpack.c.bf16 %v44_v37, %v44_v37  ;;  %v1099_v39 = vld [vmem:[#allocation2 + $0x138] sm:$0xff]  }
  0x19   :  { %956 = vmatpush3.bf16.msra.mxu1 %v1077_v11  ;;  %v42_v31 = vld [vmem:[%s1309_s0 + $0x8] sm:$0xff]  ;;  %v41_v34 = vld [vmem:[%s1309_s0] sm:$0xff]  ;;  %v43_v40 = vld [vmem:[%s1309_s0 + $0x10] sm:$0xff] }
  0x1a   :  { %957 = vmatprep.subr.bf16.mxu1 %v1080_v14  ;;  %v49_v32 = vpack.c.bf16 %v42_v31, %v42_v31  ;;  %v48_v35 = vpack.c.bf16 %v41_v34, %v41_v34  ;;  %530 = vmatprep.mubr.bf16.mxu1 %v51_v38  ;;  %v50_v41 = vpack.c.bf16 %v43_v40, %v43_v40  ;;  %v1100_v42 = vld [vmem:[#allocation2 + $0x170] sm:$0xff]   ;;  %v1102_v45 = vld [vmem:[#allocation2 + $0x168] sm:$0xff]   ;;  %v1104_v47 = vld [vmem:[#allocation2 + $0x160] sm:$0xff]  }
  0x1b   :  { %936 = vmatpush3.bf16.msra.mxu0 %v1079_v13  ;;  %v1101_v43 = vld [vmem:[#allocation2 + $0x130] sm:$0xff]   ;;  %v1103_v46 = vld [vmem:[#allocation2 + $0x128] sm:$0xff]   ;;  %v1105_v48 = vld [vmem:[#allocation2 + $0x120] sm:$0xff]  }
  0x1c   :  { %937 = vmatprep.subr.bf16.mxu0 %v1082_v16  ;;  %490 = vmatprep.mubr.bf16.mxu0 %v49_v32  ;;  %v1106_v49 = vld [vmem:[#allocation2 + $0x158] sm:$0xff]   ;;  %v1108_v51 = vld [vmem:[#allocation2 + $0x150] sm:$0xff]   ;;  %v1114_v53 = vld [vmem:[#allocation2 + $0x180] sm:$0xff]  }
  0x1d   :  { %958 = vmatpush3.bf16.msra.mxu1 %v1081_v15  ;;  %v1107_v50 = vld [vmem:[#allocation2 + $0x118] sm:$0xff]   ;;  %v1109_v52 = vld [vmem:[#allocation2 + $0x110] sm:$0xff]   ;;  %v46_v54 = vld [vmem:[%s1309_s0 + $0x28] sm:$0xff] }
  0x1e   :  { %959 = vmatprep.subr.bf16.mxu1 %v1084_v18  ;;  %v1110_v55 = vld [vmem:[#allocation2 + $0x148] sm:$0xff]   ;;  %v53_v56 = vpack.c.bf16 %v46_v54, %v46_v54  ;;  %v47_v57 = vld [vmem:[%s1309_s0 + $0x30] sm:$0xff]  ;;  %v1112_v60 = vld [vmem:[#allocation2 + $0x140] sm:$0xff]  }
  0x1f   :  { %938 = vmatpush3.bf16.msra.mxu0 %v1083_v17  ;;  %v54_v58 = vpack.c.bf16 %v47_v57, %v47_v57  ;;  %v1111_v59 = vld [vmem:[#allocation2 + $0x108] sm:$0xff]   ;;  %v1113_v61 = vld [vmem:[#allocation2 + $0x100] sm:$0xff]   ;;  %v1115_v0 = vld [vmem:[%s1312_s3 + $0x38] sm:$0xff]  }
  0x20   :  { %939 = vmatprep.subr.bf16.mxu0 %v1086_v20  ;;  %v45_v62 = vld [vmem:[%s1309_s0 + $0x20] sm:$0xff]  ;;  %v1116_v1 = vld [vmem:[%s1312_s3 + $0x30] sm:$0xff]   ;;  %v1117_v2 = vld [vmem:[%s1312_s3 + $0x28] sm:$0xff]  }
  0x21   :  { %960 = vmatpush3.bf16.msra.mxu1 %v1085_v19  ;;  %v52_v63 = vpack.c.bf16 %v45_v62, %v45_v62  ;;  %v1118_v3 = vld [vmem:[%s1312_s3 + $0x20] sm:$0xff]   ;;  %v1119_v4 = vld [vmem:[%s1312_s3 + $0x18] sm:$0xff]   ;;  %v1120_v5 = vld [vmem:[%s1312_s3 + $0x10] sm:$0xff]  }
  0x22   :  { %961 = vmatprep.subr.bf16.mxu1 %v1088_v22  ;;  %v1121_v6 = vld [vmem:[%s1312_s3 + $0x8] sm:$0xff]   ;;  %v1122_v7 = vld [vmem:[%s1312_s3] sm:$0xff]   ;;  %v1123_v8 = vld [vmem:[%s1314_s5 + $0x38] sm:$0xff]  }
  0x23   :  { %940 = vmatpush3.bf16.msra.mxu0 %v1087_v21  ;;  %v1124_v9 = vld [vmem:[%s1314_s5 + $0x30] sm:$0xff]   ;;  %v1125_v10 = vld [vmem:[%s1314_s5 + $0x28] sm:$0xff]   ;;  %v1126_v11 = vld [vmem:[%s1314_s5 + $0x20] sm:$0xff]  }
  0x24   :  { %941 = vmatprep.subr.bf16.mxu0 %v1090_v24  ;;  %v1127_v12 = vld [vmem:[%s1314_s5 + $0x18] sm:$0xff]   ;;  %v1128_v13 = vld [vmem:[%s1314_s5 + $0x10] sm:$0xff]   ;;  %v1129_v40 = vld [vmem:[%s1314_s5 + $0x8] sm:$0xff]  }
  0x25   :  { %962 = vmatpush3.bf16.msra.mxu1 %v1089_v23 }
  0x26   :  { %963 = vmatprep.subr.bf16.mxu1 %v1092_v26 }
  0x27   :  { %942 = vmatpush3.bf16.msra.mxu0 %v1091_v25 }
  0x28   :  { %943 = vmatprep.subr.bf16.mxu0 %v1094_v28 }
  0x29   :  { %964 = vmatpush3.bf16.msra.mxu1 %v1093_v27  ;;  %v860_v27 = vld [vmem:[%s1311_s2] ss:$0 sm:$0xff] }
  0x2a   :  { %965 = vmatprep.subr.bf16.mxu1 %v1096_v30 }
  0x2b   :  { %944 = vmatpush3.bf16.msra.mxu0 %v1095_v29 }
  0x2c   :  { %973 = vmatprep.subr.bf16.mxu0 %v1098_v36 }
  0x2d   :  { %966 = vmatpush3.bf16.msra.mxu1 %v1097_v33 }
  0x2e   :  { %491 = vmatmul.mubr.bf16.vlgmr.msra.gmra.mxu0 %v48_v35  ;;  %1015 = vmatprep.subr.bf16.mxu1 %v1160_v44 }
  0x2f   :  { %974 = vmatpush3.bf16.msra.mxu0 %v1099_v39  ;;  %570 = vmatprep.mubr.bf16.mxu0 %v53_v56 }
  0x30   :  { %531 = vmatmul.mubr.bf16.vlgmr.msra.gmra.mxu1 %v50_v41  ;;  %975 = vmatprep.subr.bf16.mxu0 %v1100_v42  ;;  %v1130_v41 = vld [vmem:[%s1314_s5] sm:$0xff]  }
  0x31   :  { %1017 = vmatprep.mubr.msk.bf16.mxu1 %vm1161_vm0, %v1160_v44  ;;  %1016 = vmatpush3.bf16.msra.mxu1 %v1114_v53  ;;  %v911_v42 = vld [vmem:[%s1313_s4] ss:$0 sm:$0xff] }
  0x32   :  { %1021 = vmatprep.subr.bf16.mxu1 %v1160_v44 }
  0x33   :  { %976 = vmatpush3.bf16.msra.mxu0 %v1101_v43 }
  0x34   :  { %977 = vmatprep.subr.bf16.mxu0 %v1102_v45 }
  0x37   :  { %978 = vmatpush3.bf16.msra.mxu0 %v1103_v46 }
  0x38   :  { %979 = vmatprep.subr.bf16.mxu0 %v1104_v47  ;;  %1018 = vmatmul.mubr.msk.bf16.vlgmr.msra.gmra.mxu1 %vm454_vm1, %v54_v58 }
  0x39   :  { %1037 = vmatprep.mubr.msk.bf16.mxu1 %vm1161_vm0, %v1160_v44  ;;  %1022 = vmatpush3.bf16.msra.mxu1 %v1115_v0 }
  0x3a   :  { %1023 = vmatprep.subr.bf16.mxu1 %v1160_v44 }
  0x3b   :  { %980 = vmatpush3.bf16.msra.mxu0 %v1105_v48 }
  0x3c   :  { %981 = vmatprep.subr.bf16.mxu0 %v1106_v49 }
  0x3d   :  { %1024 = vmatpush3.bf16.msra.mxu1 %v1116_v1 }
  0x3e   :  { %1025 = vmatprep.subr.bf16.mxu1 %v1160_v44 }
  0x3f   :  { %982 = vmatpush3.bf16.msra.mxu0 %v1107_v50 }
  0x40   :  { %983 = vmatprep.subr.bf16.mxu0 %v1108_v51 }
  0x41   :  { %1026 = vmatpush3.bf16.msra.mxu1 %v1117_v2 }
  0x42   :  { %1027 = vmatprep.subr.bf16.mxu1 %v1160_v44 }
  0x43   :  { %984 = vmatpush3.bf16.msra.mxu0 %v1109_v52 }
  0x44   :  { %985 = vmatprep.subr.bf16.mxu0 %v1110_v55 }
  0x45   :  { %1028 = vmatpush3.bf16.msra.mxu1 %v1118_v3 }
  0x46   :  { %1029 = vmatprep.subr.bf16.mxu1 %v1160_v44 }
  0x47   :  { %986 = vmatpush3.bf16.msra.mxu0 %v1111_v59 }
  0x48   :  { %987 = vmatprep.subr.bf16.mxu0 %v1112_v60 }
  0x49   :  { %1030 = vmatpush3.bf16.msra.mxu1 %v1119_v4 }
  0x4a   :  { %1031 = vmatprep.subr.bf16.mxu1 %v1160_v44 }
  0x4b   :  { %988 = vmatpush3.bf16.msra.mxu0 %v1113_v61 }
  0x4c   :  { %1041 = vmatprep.subr.bf16.mxu0 %v1160_v44 }
  0x4d   :  { %1032 = vmatpush3.bf16.msra.mxu1 %v1120_v5 }
  0x4e   :  { %571 = vmatmul.mubr.bf16.vlgmr.msra.gmra.mxu0 %v52_v63  ;;  %1033 = vmatprep.subr.bf16.mxu1 %v1160_v44 }
  0x4f   :  { %1057 = vmatprep.mubr.msk.bf16.mxu0 %vm1161_vm0, %v1160_v44  ;;  %1042 = vmatpush3.bf16.msra.mxu0 %v1123_v8 }
  0x50   :  { %1043 = vmatprep.subr.bf16.mxu0 %v1160_v44 }
  0x51   :  { %1034 = vmatpush3.bf16.msra.mxu1 %v1121_v6 }
  0x52   :  { %1035 = vmatprep.subr.bf16.mxu1 %v1160_v44 }
  0x53   :  { %1044 = vmatpush3.bf16.msra.mxu0 %v1124_v9 }
  0x54   :  { %1045 = vmatprep.subr.bf16.mxu0 %v1160_v44 }
  0x55   :  { %1036 = vmatpush3.bf16.msra.mxu1 %v1122_v7 }
  0x57   :  { %1046 = vmatpush3.bf16.msra.mxu0 %v1125_v10 }
  0x58   :  { %1047 = vmatprep.subr.bf16.mxu0 %v1160_v44 }
  0x5b   :  { %1048 = vmatpush3.bf16.msra.mxu0 %v1126_v11 }
  0x5c   :  { %1049 = vmatprep.subr.bf16.mxu0 %v1160_v44 }
  0x5f   :  { %1050 = vmatpush3.bf16.msra.mxu0 %v1127_v12 }
  0x60   :  { %1051 = vmatprep.subr.bf16.mxu0 %v1160_v44 }
  0x63   :  { %1052 = vmatpush3.bf16.msra.mxu0 %v1128_v13 }
  0x64   :  { %1053 = vmatprep.subr.bf16.mxu0 %v1160_v44 }
  0x67   :  { %1054 = vmatpush3.bf16.msra.mxu0 %v1129_v40 }
  0x68   :  { %1055 = vmatprep.subr.bf16.mxu0 %v1160_v44  ;;  %v920_v44 = vld [vmem:[%s1315_s6] ss:$0 sm:$0xff] }
  0x6b   :  { %1056 = vmatpush3.bf16.msra.mxu0 %v1130_v41 }
  0xee   :  { %v945_v14 = vpop.f32.mrf.mxu0 }
  0xf0   :  { %v946_v15 = vpop.f32.mrf.mxu0  ;;  %v967_v16 = vpop.f32.mrf.mxu1 }
  0xf1   :  { %v947_v26 = vadd.f32 %v946_v15, %v945_v14 }
  0xf2   :  { %v948_v17 = vpop.f32.mrf.mxu0  ;;  %v968_v18 = vpop.f32.mrf.mxu1 }
  0xf3   :  { %v493_v28 = vadd.f32 %v947_v26, %v860_v27  ;;  %v969_v29 = vadd.f32 %v968_v18, %v967_v16 }
  0xf4   :  { %v949_v19 = vpop.f32.mrf.mxu0  ;;  %v970_v20 = vpop.f32.mrf.mxu1 }
  0xf5   :  { %v533_v32 = vadd.f32 %v969_v29, %v493_v28 }
  0xf6   :  { %v971_v21 = vpop.f32.mrf.mxu1 }
  0xf8   :  { %v612_v22 = vpop.f32.mrf.mxu1 }
  0xfa   :  { %v1019_v23 = vpop.f32.mrf.mxu1 }
  0xfc   :  { %v615_v24 = vpop.f32.mrf.mxu1 }
  0xfe   :  { %v1020_v25 = vpop.f32.mrf.mxu1 }
 0x10e   :  { %v989_v30 = vpop.f32.mrf.mxu0 }
 0x110   :  { %v990_v31 = vpop.f32.mrf.mxu0 }
 0x111   :  { %v991_v33 = vadd.f32 %v990_v31, %v989_v30 }
 0x112   :  { %v992_v34 = vpop.f32.mrf.mxu0 }
 0x113   :  { %v573_v35 = vadd.f32 %v991_v33, %v533_v32 }
 0x114   :  { %v993_v36 = vpop.f32.mrf.mxu0 }
 0x115   :  { %v613_v37 = vadd.f32 %v612_v22, %v573_v35 }
 0x117   :  { %v618_v38 = vmax.f32 %v613_v37, 0.0 }
 0x119   :  { %v619_v39 = vpack.c.bf16 %v618_v38, %v618_v38 }
 0x11b   :  { %1038 = vmatmul.mubr.bf16.vlgmr.msra.gmra.mxu1 %v619_v39 }
 0x1db   :  { %v725_v43 = vpop.f32.mrf.mxu1 }
 0x1dc   :  { %v726_v45 = vadd.f32 %v911_v42, %v725_v43 }
 0x1dd   :  { %v1039_v46 = vpop.f32.mrf.mxu1 }
 0x1de   :  { %v731_v47 = vmax.f32 %v726_v45, 0.0 }
 0x1df   :  { %v728_v48 = vpop.f32.mrf.mxu1 }
 0x1e0   :  { %v732_v49 = vpack.c.bf16 %v731_v47, %v731_v47 }
 0x1e1   :  { %v1040_v50 = vpop.f32.mrf.mxu1 }
 0x1e2   :  { %1058 = vmatmul.mubr.bf16.vlgmr.msra.gmra.mxu0 %v732_v49 }
 0x2a2   :  { %v838_v51 = vpop.f32.mrf.mxu0 }
 0x2a3   :  { %v839_v52 = vadd.f32 %v920_v44, %v838_v51 }
 0x2a4   :  { %v1059_v53 = vpop.f32.mrf.mxu0 }
 0x2a5   :  { %844 = vmax.xlane.f32.xlu0 %v839_v52 }
 0x2a6   :  { %v841_v54 = vpop.f32.mrf.mxu0 }
 0x2a8   :  { %v1060_v55 = vpop.f32.mrf.mxu0 }
 0x32e   :  { %v845_v56 = vpop.xlane.xlu0 %844 }
 0x32f   :  { %v846_v57 = vsub.f32 %v839_v52, %v845_v56 }
 0x331   :  { %v847_v58 = vmul.f32 1.442695, %v846_v57 }
 0x333   :  { %1131 = vpow2.f32 %v847_v58 }
 0x340   :  { %v1132_v59 = vpop.eup %1131 }
 0x341   :  { %849 = vadd.xlane.f32.xlu0 %v1132_v59 }
 0x3ca   :  { %v850_v60 = vpop.xlane.xlu0 %849 }
 0x3cb   :  { %1133 = vrcp.f32 %v850_v60 }
 0x3d8   :  { %v1134_v61 = vpop.eup %1133 }
 0x3d9   :  { %v852_v62 = vmul.f32 %v1134_v61, %v1132_v59 }
 0x3db   :  { %v853_v63 = vpack.c.bf16 %v852_v62, %v852_v62 }
 0x3dd   :  { %854 = vst [vmem:[%s1316_s7] sm:$0xf] %v853_v63 }
 0x3de   :  { %859 = vsyncpa [#allocation3], 1 }

</bundles_post_ra>
